<compile_context>
chip_gen: v6e
topology: v6e:2x2x1
jax: 0.10.0
libtpu: 0.0.40
codegen_flags: <defaults>
</compile_context>

<pallas_src>
import jax
import jax.numpy as jnp
import numpy as np
from jax import lax
from jax.experimental import pallas as pl
from jax.experimental.pallas import tpu as pltpu


def pinsage_forward(x_bf, a0n_bf, a1n_bf, w_slab_bf, aux_slab, sel_f32):
    """Fused PinSAGE forward: projector -> 2x WeightedSAGEConv -> scorer(pos/neg) -> hinge.

    x_bf       (N0, FP)   bf16  padded item features for all block-0 src nodes
    a0n_bf     (N1P, N0)  bf16  block-0 adjacency, rows pre-scaled by 1/clamp(ws, 1)
    a1n_bf     (N2, N1P)  bf16  block-1 adjacency, rows pre-scaled by 1/clamp(ws, 1)
    w_slab_bf  (7*HP, HP) bf16  [Wp; Q0; Wn0; Wd0; Q1; Wn1; Wd1]
    aux_slab   (16, HP)   f32   rows 0..4 = bp,bq0,bw0,bq1,bw1; rows 8..8+E lane0 = b_neg-b_pos
    sel_f32    (3E, N2)   f32   [one_hot(pos_u); one_hot(pos_v); one_hot(neg_v)]
    returns    (E,)       f32   per-edge hinge  max(neg_score - pos_score + 1, 0)
    """
    n2 = a1n_bf.shape[0]
    hp = w_slab_bf.shape[1]
    e = sel_f32.shape[0] // 3

    def kernel(x_ref, a0_ref, a1_ref, w_ref, aux_ref, sel_ref, o_ref):
        f32, bf16 = jnp.float32, jnp.bfloat16

        aux = aux_ref[...]
        bp_row = aux[0:1, :]
        bq0 = aux[1:2, :]
        bw0 = aux[2:3, :]
        bq1 = aux[3:4, :]
        bw1 = aux[4:5, :]
        b_diff = aux[8:8 + e, 0:1]                       # (E,1) = b_neg - b_pos (host-gathered)

        # Static, tile-aligned slices of the packed weight slab.
        wp = w_ref[0 * hp:1 * hp, :]
        q0 = w_ref[1 * hp:2 * hp, :]
        w0 = w_ref[2 * hp:4 * hp, :]                     # [Wn0; Wd0]  (2*HP, HP)
        q1 = w_ref[4 * hp:5 * hp, :]
        w1 = w_ref[5 * hp:7 * hp, :]                     # [Wn1; Wd1]

        def mm(a_bf, w_bf):                              # bf16 MXU operands, f32 accumulation
            return jnp.dot(a_bf, w_bf, preferred_element_type=f32)

        # WeightedSAGEConv (dropout = eval identity).  Adjacency is pre-normalized on the
        # host, so agg == (sum_e w * n) / clamp(ws, 1) directly.  Concat formulation gives a
        # single K=2*HP matmul per layer.
        def sage(h_src_bf, h_dst_bf, adj_bf, q, bq, wcat, bw):
            n = jnp.maximum(mm(h_src_bf, q) + bq, 0.0)                       # act(Q h_src)
            agg = mm(adj_bf, n.astype(bf16))                                 # normalized nbr agg
            cat = jnp.concatenate([agg.astype(bf16), h_dst_bf], axis=1)      # (M, 2*HP) bf16
            z = jnp.maximum(mm(cat, wcat) + bw, 0.0)                         # act(W [agg, h_dst])
            ss = jnp.sum(z * z, axis=1, keepdims=True)
            inv_norm = jnp.where(ss > 0.0, lax.rsqrt(ss), 1.0)               # L2 norm (EUP rsqrt)
            return z * inv_norm

        # LinearProjector for all block-0 src nodes.
        h_item = mm(x_ref[...], wp) + bp_row             # (N0, HP) f32
        h_item_bf = h_item.astype(bf16)                  # cast once, reused as src and dst

        # blocks[0]: padded dst rows have zero adjacency rows and are later killed by the
        # zero columns of a1n_bf, so using all src rows as dst is exact where it matters.
        h1 = sage(h_item_bf, h_item_bf, a0_ref[...], q0, bq0, w0, bw0)
        h1_bf = h1.astype(bf16)
        # blocks[1]: dst nodes are the first n2 src nodes.
        h2 = sage(h1_bf, h1_bf[:n2], a1_ref[...], q1, bq1, w1, bw1)

        # get_repr: proj(blocks[-1].dstdata) == h_item[:n2] (dst nodes prefix block-0 src).
        h_final = h_item[:n2] + h2                       # (N2, HP) f32

        # ItemToItemScorer (pos & neg) + hinge via one merged one-hot gather matmul.
        # (Default-precision f32 matmul matched the exact-gather reference at rtol=1e-3;
        #  the realistic-size path in the TODO uses true index gathers instead.)
        g = jnp.dot(sel_ref[...], h_final, preferred_element_type=f32)       # (3E, HP)
        hu = g[0:e]                                      # heads shared by pos & neg graphs
        hv_pos = g[e:2 * e]
        hv_neg = g[2 * e:3 * e]
        score_diff = jnp.sum(hu * (hv_neg - hv_pos), axis=1, keepdims=True)  # neg - pos (no bias)
        o_ref[...] = jnp.maximum(score_diff + b_diff + 1.0, 0.0)             # (E,1) hinge

    vmem = pltpu.MemorySpace.VMEM
    out = pl.pallas_call(
        kernel,
        out_shape=jax.ShapeDtypeStruct((e, 1), jnp.float32),
        # No grid: a single invocation with whole arrays resident once in VMEM
        # (no double-buffering -- nothing to pipeline).
        in_specs=[pl.BlockSpec(memory_space=vmem)] * 6,
        out_specs=pl.BlockSpec(memory_space=vmem),
    )(x_bf, a0n_bf, a1n_bf, w_slab_bf, aux_slab, sel_f32)
    return out[:, 0]


if __name__ == "__main__":
    # ---- small deterministic problem (logical, unpadded shapes) ----
    F_IN, H = 16, 32
    N0, N1, N2 = 16, 12, 8        # block0 src / block0 dst (=block1 src) / block1 dst (seeds)
    E = 8                         # edges in pos_graph and neg_graph
    N_FULL = 64                   # nodes in the full graph (scorer bias table)
    HP, FP, N1P = 128, 128, 16    # lane-padded hidden/feature dims; sublane-padded block0 dst
    bf = jnp.bfloat16

    keys = jax.random.split(jax.random.PRNGKey(0), 16)
    x = jax.random.normal(keys[0], (N0, F_IN), jnp.float32)         # raw item features
    A0 = jax.random.uniform(keys[1], (N1, N0), dtype=jnp.float32)   # block0 edge weights
    A1 = jax.random.uniform(keys[2], (N2, N1), dtype=jnp.float32)   # block1 edge weights

    # LinearProjector params
    Wp = jax.random.normal(keys[3], (F_IN, H), jnp.float32) * 0.1
    bp = jax.random.normal(keys[4], (1, H), jnp.float32) * 0.1

    # SAGENet params (2 WeightedSAGEConv layers; W = [Wn; Wd] split of the concat Linear)
    def sage_params(k):
        ks = jax.random.split(k, 5)
        return dict(
            Q=jax.random.normal(ks[0], (H, H), jnp.float32) * 0.1,
            bq=jax.random.normal(ks[1], (1, H), jnp.float32) * 0.1,
            Wn=jax.random.normal(ks[2], (H, H), jnp.float32) * 0.1,
            Wd=jax.random.normal(ks[3], (H, H), jnp.float32) * 0.1,
            bw=jax.random.normal(ks[4], (1, H), jnp.float32) * 0.1,
        )
    p0, p1 = sage_params(keys[5]), sage_params(keys[6])

    # ItemToItemScorer bias over full-graph node ids; seed items carry global ids
    bias = jax.random.normal(keys[7], (N_FULL,), jnp.float32) * 0.1
    nid = jax.random.randint(keys[8], (N2,), 0, N_FULL)
    pos_u = jax.random.randint(keys[9], (E,), 0, N2)
    pos_v = jax.random.randint(keys[10], (E,), 0, N2)
    neg_u = pos_u                                         # neg graph shares heads
    neg_v = jax.random.randint(keys[11], (E,), 0, N2)

    # ---- host-side packing: 6 operands, bf16 features/adjacency, degrees pre-folded ----
    def pad2(a, rows, cols):
        return jnp.pad(a, ((0, rows - a.shape[0]), (0, cols - a.shape[1])))

    # Fold ws = clamp(sum_e w, 1) into the adjacency so the kernel needs no degree math.
    A0n = A0 / jnp.maximum(A0.sum(axis=1, keepdims=True), 1.0)
    A1n = A1 / jnp.maximum(A1.sum(axis=1, keepdims=True), 1.0)
    A0n_pad = pad2(A0n, N1P, N0).astype(bf)    # zero rows for padded dst nodes
    A1n_pad = pad2(A1n, N2, N1P).astype(bf)    # zero cols for padded src nodes (must stay zero)
    x_pad = pad2(x, N0, FP).astype(bf)

    # One bf16 weight slab: [Wp; Q0; Wn0; Wd0; Q1; Wn1; Wd1], each block padded to (HP,HP).
    def pad_w(w):
        return pad2(w, HP, HP)
    w_slab = jnp.concatenate(
        [pad2(Wp, FP, HP), pad_w(p0["Q"]), pad_w(p0["Wn"]), pad_w(p0["Wd"]),
         pad_w(p1["Q"]), pad_w(p1["Wn"]), pad_w(p1["Wd"])], axis=0).astype(bf)   # (7*HP, HP)

    # One f32 aux slab: 5 bias rows + the per-edge scorer-bias difference in lane 0.
    b_pos = bias[nid[pos_u]] + bias[nid[pos_v]]
    b_neg = bias[nid[neg_u]] + bias[nid[neg_v]]
    aux_slab = jnp.zeros((16, HP), jnp.float32)
    aux_slab = aux_slab.at[0, :H].set(bp[0]).at[1, :H].set(p0["bq"][0]).at[2, :H].set(p0["bw"][0])
    aux_slab = aux_slab.at[3, :H].set(p1["bq"][0]).at[4, :H].set(p1["bw"][0])
    aux_slab = aux_slab.at[8:8 + E, 0].set(b_neg - b_pos)

    # Merged one-hot selection matrix [Su_pos; Sv_pos; Sv_neg] (Su_neg == Su_pos, dropped).
    sel = jnp.concatenate(
        [jax.nn.one_hot(pos_u, N2, dtype=jnp.float32),
         jax.nn.one_hot(pos_v, N2, dtype=jnp.float32),
         jax.nn.one_hot(neg_v, N2, dtype=jnp.float32)], axis=0)               # (3E, N2)

    fwd = jax.jit(pinsage_forward)
    out = jax.block_until_ready(fwd(x_pad, A0n_pad, A1n_pad, w_slab, aux_slab, sel))   # (E,)

    # ---- pure-JAX reference (unpadded shapes, same bf16-at-MXU formulation) ----
    def ref_forward():
        f32 = jnp.float32

        def mm(a, w):
            return jnp.dot(a.astype(bf), w.astype(bf), preferred_element_type=f32)

        def sage(h_src, h_dst, a_nrm_bf, p):
            n = jnp.maximum(mm(h_src, p["Q"]) + p["bq"], 0.0)
            agg = jnp.dot(a_nrm_bf, n.astype(bf), preferred_element_type=f32)
            wcat = jnp.concatenate([p["Wn"], p["Wd"]], axis=0)
            z = jnp.maximum(mm(jnp.concatenate([agg, h_dst], axis=1), wcat) + p["bw"], 0.0)
            ss = jnp.sum(z * z, axis=1, keepdims=True)
            return z * jnp.where(ss > 0.0, lax.rsqrt(ss), 1.0)

        h_item = mm(x, Wp) + bp
        h1 = sage(h_item, h_item[:N1], A0n.astype(bf), p0)
        h2 = sage(h1, h1[:N2], A1n.astype(bf), p1)
        hf = h_item[:N2] + h2                      # proj(blocks[-1].dstdata) == h_item[:N2]
        pos = (hf[pos_u] * hf[pos_v]).sum(-1) + bias[nid[pos_u]] + bias[nid[pos_v]]
        neg = (hf[neg_u] * hf[neg_v]).sum(-1) + bias[nid[neg_u]] + bias[nid[neg_v]]
        return jnp.maximum(neg - pos + 1.0, 0.0)

    ref = jax.block_until_ready(ref_forward())
    np.testing.assert_allclose(np.asarray(out), np.asarray(ref), rtol=1e-3, atol=2e-4)

    print("KERNEL_OK")
</pallas_src>

<mosaic_0001>
module attributes {stable_mosaic.version = 11 : i64} {
  func.func @kernel(%arg0: memref<16x128xbf16, #tpu.memory_space<vmem>>, %arg1: memref<16x16xbf16, #tpu.memory_space<vmem>>, %arg2: memref<8x16xbf16, #tpu.memory_space<vmem>>, %arg3: memref<896x128xbf16, #tpu.memory_space<vmem>>, %arg4: memref<16x128xf32, #tpu.memory_space<vmem>>, %arg5: memref<24x8xf32, #tpu.memory_space<vmem>>, %arg6: memref<8x1xf32, #tpu.memory_space<vmem>>) attributes {dimension_semantics = [], scalar_prefetch = 0 : i64, scratch_operands = 0 : i64, tpu.core_type = #tpu.core_type<tc>} {
    %c0 = arith.constant 0 : index
    %c0_0 = arith.constant 0 : index
    %0 = vector.load %arg4[%c0, %c0_0] : memref<16x128xf32, #tpu.memory_space<vmem>>, vector<16x128xf32>
    %1 = vector.extract_strided_slice %0 {offsets = [0, 0], sizes = [1, 128], strides = [1, 1]} : vector<16x128xf32> to vector<1x128xf32>
    %2 = vector.extract_strided_slice %0 {offsets = [1, 0], sizes = [1, 128], strides = [1, 1]} : vector<16x128xf32> to vector<1x128xf32>
    %3 = vector.extract_strided_slice %0 {offsets = [2, 0], sizes = [1, 128], strides = [1, 1]} : vector<16x128xf32> to vector<1x128xf32>
    %4 = vector.extract_strided_slice %0 {offsets = [3, 0], sizes = [1, 128], strides = [1, 1]} : vector<16x128xf32> to vector<1x128xf32>
    %5 = vector.extract_strided_slice %0 {offsets = [4, 0], sizes = [1, 128], strides = [1, 1]} : vector<16x128xf32> to vector<1x128xf32>
    %6 = vector.extract_strided_slice %0 {offsets = [8, 0], sizes = [8, 1], strides = [1, 1]} : vector<16x128xf32> to vector<8x1xf32>
    %c0_1 = arith.constant 0 : index
    %c0_2 = arith.constant 0 : index
    %7 = vector.load %arg3[%c0_1, %c0_2] : memref<896x128xbf16, #tpu.memory_space<vmem>>, vector<128x128xbf16>
    %c128 = arith.constant 128 : index
    %c0_3 = arith.constant 0 : index
    %8 = vector.load %arg3[%c128, %c0_3] : memref<896x128xbf16, #tpu.memory_space<vmem>>, vector<128x128xbf16>
    %c256 = arith.constant 256 : index
    %c0_4 = arith.constant 0 : index
    %9 = vector.load %arg3[%c256, %c0_4] : memref<896x128xbf16, #tpu.memory_space<vmem>>, vector<256x128xbf16>
    %c512 = arith.constant 512 : index
    %c0_5 = arith.constant 0 : index
    %10 = vector.load %arg3[%c512, %c0_5] : memref<896x128xbf16, #tpu.memory_space<vmem>>, vector<128x128xbf16>
    %c640 = arith.constant 640 : index
    %c0_6 = arith.constant 0 : index
    %11 = vector.load %arg3[%c640, %c0_6] : memref<896x128xbf16, #tpu.memory_space<vmem>>, vector<256x128xbf16>
    %c0_7 = arith.constant 0 : index
    %c0_8 = arith.constant 0 : index
    %12 = vector.load %arg0[%c0_7, %c0_8] : memref<16x128xbf16, #tpu.memory_space<vmem>>, vector<16x128xbf16>
    %cst = arith.constant dense<0.000000e+00> : vector<16x128xf32>
    %13 = tpu.matmul %12, %7, %cst {dimension_numbers = #tpu.dot_dimension_numbers<[1], [0], [0], [1], [0, 0, 1, 1], [], []>} : vector<16x128xbf16>, vector<128x128xbf16>, vector<16x128xf32> -> vector<16x128xf32>
    %14 = vector.broadcast %1 : vector<1x128xf32> to vector<16x128xf32>
    %15 = arith.addf %13, %14 : vector<16x128xf32>
    %16 = arith.truncf %15 : vector<16x128xf32> to vector<16x128xbf16>
    %c0_9 = arith.constant 0 : index
    %c0_10 = arith.constant 0 : index
    %17 = vector.load %arg1[%c0_9, %c0_10] : memref<16x16xbf16, #tpu.memory_space<vmem>>, vector<16x16xbf16>
    %cst_11 = arith.constant dense<0.000000e+00> : vector<16x128xf32>
    %18 = tpu.matmul %16, %8, %cst_11 {dimension_numbers = #tpu.dot_dimension_numbers<[1], [0], [0], [1], [0, 0, 1, 1], [], []>} : vector<16x128xbf16>, vector<128x128xbf16>, vector<16x128xf32> -> vector<16x128xf32>
    %19 = vector.broadcast %2 : vector<1x128xf32> to vector<16x128xf32>
    %20 = arith.addf %18, %19 : vector<16x128xf32>
    %cst_12 = arith.constant 0.000000e+00 : f32
    %21 = vector.broadcast %cst_12 : f32 to vector<16x128xf32>
    %22 = arith.maximumf %20, %21 : vector<16x128xf32>
    %23 = arith.truncf %22 : vector<16x128xf32> to vector<16x128xbf16>
    %cst_13 = arith.constant dense<0.000000e+00> : vector<16x128xf32>
    %24 = tpu.matmul %17, %23, %cst_13 {dimension_numbers = #tpu.dot_dimension_numbers<[1], [0], [0], [1], [0, 0, 1, 1], [], []>} : vector<16x16xbf16>, vector<16x128xbf16>, vector<16x128xf32> -> vector<16x128xf32>
    %25 = arith.truncf %24 : vector<16x128xf32> to vector<16x128xbf16>
    %26 = tpu.concatenate %25, %16 in 1 : vector<16x128xbf16>, vector<16x128xbf16> -> vector<16x256xbf16>
    %cst_14 = arith.constant dense<0.000000e+00> : vector<16x128xf32>
    %27 = tpu.matmul %26, %9, %cst_14 {dimension_numbers = #tpu.dot_dimension_numbers<[1], [0], [0], [1], [0, 0, 1, 1], [], []>} : vector<16x256xbf16>, vector<256x128xbf16>, vector<16x128xf32> -> vector<16x128xf32>
    %28 = vector.broadcast %3 : vector<1x128xf32> to vector<16x128xf32>
    %29 = arith.addf %27, %28 : vector<16x128xf32>
    %cst_15 = arith.constant 0.000000e+00 : f32
    %30 = vector.broadcast %cst_15 : f32 to vector<16x128xf32>
    %31 = arith.maximumf %29, %30 : vector<16x128xf32>
    %32 = arith.mulf %31, %31 : vector<16x128xf32>
    %cst_16 = arith.constant dense<0.000000e+00> : vector<16xf32>
    %33 = vector.multi_reduction <add>, %32, %cst_16 [1] : vector<16x128xf32> to vector<16xf32>
    %34 = vector.shape_cast %33 : vector<16xf32> to vector<16x1xf32>
    %cst_17 = arith.constant 0.000000e+00 : f32
    %35 = vector.broadcast %cst_17 : f32 to vector<16x1xf32>
    %36 = arith.cmpf ogt, %34, %35 : vector<16x1xf32>
    %37 = math.rsqrt %34 : vector<16x1xf32>
    %cst_18 = arith.constant 1.000000e+00 : f32
    %38 = vector.broadcast %cst_18 : f32 to vector<16x1xf32>
    %39 = arith.select %36, %37, %38 : vector<16x1xi1>, vector<16x1xf32>
    %40 = vector.broadcast %39 : vector<16x1xf32> to vector<16x128xf32>
    %41 = arith.mulf %31, %40 : vector<16x128xf32>
    %42 = arith.truncf %41 : vector<16x128xf32> to vector<16x128xbf16>
    %43 = vector.extract_strided_slice %42 {offsets = [0, 0], sizes = [8, 128], strides = [1, 1]} : vector<16x128xbf16> to vector<8x128xbf16>
    %c0_19 = arith.constant 0 : index
    %c0_20 = arith.constant 0 : index
    %44 = vector.load %arg2[%c0_19, %c0_20] : memref<8x16xbf16, #tpu.memory_space<vmem>>, vector<8x16xbf16>
    %cst_21 = arith.constant dense<0.000000e+00> : vector<16x128xf32>
    %45 = tpu.matmul %42, %10, %cst_21 {dimension_numbers = #tpu.dot_dimension_numbers<[1], [0], [0], [1], [0, 0, 1, 1], [], []>} : vector<16x128xbf16>, vector<128x128xbf16>, vector<16x128xf32> -> vector<16x128xf32>
    %46 = vector.broadcast %4 : vector<1x128xf32> to vector<16x128xf32>
    %47 = arith.addf %45, %46 : vector<16x128xf32>
    %cst_22 = arith.constant 0.000000e+00 : f32
    %48 = vector.broadcast %cst_22 : f32 to vector<16x128xf32>
    %49 = arith.maximumf %47, %48 : vector<16x128xf32>
    %50 = arith.truncf %49 : vector<16x128xf32> to vector<16x128xbf16>
    %cst_23 = arith.constant dense<0.000000e+00> : vector<8x128xf32>
    %51 = tpu.matmul %44, %50, %cst_23 {dimension_numbers = #tpu.dot_dimension_numbers<[1], [0], [0], [1], [0, 0, 1, 1], [], []>} : vector<8x16xbf16>, vector<16x128xbf16>, vector<8x128xf32> -> vector<8x128xf32>
    %52 = arith.truncf %51 : vector<8x128xf32> to vector<8x128xbf16>
    %53 = tpu.concatenate %52, %43 in 1 : vector<8x128xbf16>, vector<8x128xbf16> -> vector<8x256xbf16>
    %cst_24 = arith.constant dense<0.000000e+00> : vector<8x128xf32>
    %54 = tpu.matmul %53, %11, %cst_24 {dimension_numbers = #tpu.dot_dimension_numbers<[1], [0], [0], [1], [0, 0, 1, 1], [], []>} : vector<8x256xbf16>, vector<256x128xbf16>, vector<8x128xf32> -> vector<8x128xf32>
    %55 = vector.broadcast %5 : vector<1x128xf32> to vector<8x128xf32>
    %56 = arith.addf %54, %55 : vector<8x128xf32>
    %cst_25 = arith.constant 0.000000e+00 : f32
    %57 = vector.broadcast %cst_25 : f32 to vector<8x128xf32>
    %58 = arith.maximumf %56, %57 : vector<8x128xf32>
    %59 = arith.mulf %58, %58 : vector<8x128xf32>
    %cst_26 = arith.constant dense<0.000000e+00> : vector<8xf32>
    %60 = vector.multi_reduction <add>, %59, %cst_26 [1] : vector<8x128xf32> to vector<8xf32>
    %61 = vector.shape_cast %60 : vector<8xf32> to vector<8x1xf32>
    %cst_27 = arith.constant 0.000000e+00 : f32
    %62 = vector.broadcast %cst_27 : f32 to vector<8x1xf32>
    %63 = arith.cmpf ogt, %61, %62 : vector<8x1xf32>
    %64 = math.rsqrt %61 : vector<8x1xf32>
    %cst_28 = arith.constant 1.000000e+00 : f32
    %65 = vector.broadcast %cst_28 : f32 to vector<8x1xf32>
    %66 = arith.select %63, %64, %65 : vector<8x1xi1>, vector<8x1xf32>
    %67 = vector.broadcast %66 : vector<8x1xf32> to vector<8x128xf32>
    %68 = arith.mulf %58, %67 : vector<8x128xf32>
    %69 = vector.extract_strided_slice %15 {offsets = [0, 0], sizes = [8, 128], strides = [1, 1]} : vector<16x128xf32> to vector<8x128xf32>
    %70 = arith.addf %69, %68 : vector<8x128xf32>
    %c0_29 = arith.constant 0 : index
    %c0_30 = arith.constant 0 : index
    %71 = vector.load %arg5[%c0_29, %c0_30] : memref<24x8xf32, #tpu.memory_space<vmem>>, vector<24x8xf32>
    %cst_31 = arith.constant dense<0.000000e+00> : vector<24x128xf32>
    %72 = tpu.matmul %71, %70, %cst_31 {dimension_numbers = #tpu.dot_dimension_numbers<[1], [0], [0], [1], [0, 0, 1, 1], [], []>} : vector<24x8xf32>, vector<8x128xf32>, vector<24x128xf32> -> vector<24x128xf32>
    %73 = vector.extract_strided_slice %72 {offsets = [0, 0], sizes = [8, 128], strides = [1, 1]} : vector<24x128xf32> to vector<8x128xf32>
    %74 = vector.extract_strided_slice %72 {offsets = [8, 0], sizes = [8, 128], strides = [1, 1]} : vector<24x128xf32> to vector<8x128xf32>
    %75 = vector.extract_strided_slice %72 {offsets = [16, 0], sizes = [8, 128], strides = [1, 1]} : vector<24x128xf32> to vector<8x128xf32>
    %76 = arith.subf %75, %74 : vector<8x128xf32>
    %77 = arith.mulf %73, %76 : vector<8x128xf32>
    %cst_32 = arith.constant dense<0.000000e+00> : vector<8xf32>
    %78 = vector.multi_reduction <add>, %77, %cst_32 [1] : vector<8x128xf32> to vector<8xf32>
    %79 = vector.shape_cast %78 : vector<8xf32> to vector<8x1xf32>
    %80 = arith.addf %79, %6 : vector<8x1xf32>
    %cst_33 = arith.constant 1.000000e+00 : f32
    %81 = vector.broadcast %cst_33 : f32 to vector<8x1xf32>
    %82 = arith.addf %80, %81 : vector<8x1xf32>
    %cst_34 = arith.constant 0.000000e+00 : f32
    %83 = vector.broadcast %cst_34 : f32 to vector<8x1xf32>
    %84 = arith.maximumf %82, %83 : vector<8x1xf32>
    %c0_35 = arith.constant 0 : index
    %c0_36 = arith.constant 0 : index
    %85 = vector.load %arg6[%c0_35, %c0_36] : memref<8x1xf32, #tpu.memory_space<vmem>>, vector<8x1xf32>
    tpu.vector_store %arg6[%c0_35, %c0_36], %84 {strides = array<i32>} : memref<8x1xf32, #tpu.memory_space<vmem>>, vector<8x1xf32>,
    return
  }
}

</mosaic_0001>

<bundles_post_ra>
// kernel: pinsage_forward.1
= control target key start
LH: loop header
LB: loop body
LE: loop exit
PB: predicated region body
PF: predicated region fallthrough
CT: control target
= control target key end

     0   :  { %11 = vsyncpa [#allocation3], 0  ;;  %s1444_s0 = inlined_call_operand.vmem [shape: bf16[16,128], index: 0, kind: input, shape index: {}]   ;;  %s1445_s1 = inlined_call_operand.vmem [shape: bf16[16,16], index: 1, kind: input, shape index: {}]   ;;  %s1446_s2 = inlined_call_operand.hbm [shape: bf16[8,16], index: 2, kind: input, shape index: {}]   ;;  %s1447_s3 = inlined_call_operand.hbm [shape: bf16[896,128], index: 3, kind: input, shape index: {}]   ;;  %s1448_s4 = inlined_call_operand.vmem [shape: f32[16,128], index: 4, kind: input, shape index: {}]   ;;  %s1449_s5 = inlined_call_operand.vmem [shape: f32[24,8], index: 5, kind: input, shape index: {}]   ;;  %s1450_s6 = inlined_call_operand.vmem [shape: f32[8,1], index: 6, kind: output, shape index: {}]  }
   0x1   :  { %12 = vsyncpa [#allocation5], 0  ;;  %s1310_s21 = smov [#allocation2]   ;;  %s1311_s23 = smov [#allocation4]  }
   0x2   :  { %s23_s22 = sshll.u32 %s1310_s21, 4  ;;  %s32_s24 = sshll.u32 %s1311_s23, 4  ;;  %s24_s22 = int_to_ptr.vmem [resolvable:$true] %s23_s22  ;;  %s33_s24 = int_to_ptr.vmem [resolvable:$true] %s32_s24 }
   0x3   :  { %s1274_s25 = scalar_lea.vmem %s24_s22, 64  ;;  %p1279_p1 = scmp.lt.s32.totalorder %s24_s22, %s24_s22 }
   0x4   :  { %p1275_p0 = scmp.ne.s32.totalorder %s24_s22, %s1274_s25  ;;  %p1280_p2 = scmp.lt.s32.totalorder %s1274_s25, %s1274_s25 }
   0x6   :  { %p1281_p3 = por %p1280_p2, %p1279_p1 }
   0x8   :  { %p1282_p4 = pnand %p1281_p3, %p1275_p0 }
   0xa   :  { %1285 = shalt.err (!%p1282_p4)
}
   0xb   :  { %26 = dma.hbm_to_vmem [thread:$0]  %s1446_s2, 64, %s24_s22, [#allocation3]  }
   0xc   :  { %s1294_s28 = scalar_lea.vmem %s33_s24, 7168  ;;  %p1299_p6 = scmp.lt.s32.totalorder %s33_s24, %s33_s24 }
   0xd   :  { %p1295_p5 = scmp.ne.s32.totalorder %s33_s24, %s1294_s28  ;;  %p1300_p7 = scmp.lt.s32.totalorder %s1294_s28, %s1294_s28 }
   0xf   :  { %p1301_p8 = por %p1300_p7, %p1299_p6 }
  0x11   :  { %p1302_p9 = pnand %p1301_p8, %p1295_p5 }
  0x13   :  { %1305 = shalt.err (!%p1302_p9)
}
  0x14   :  { %s1312_s29 = smov 64   ;;  %s1313_s30 = smov 4  }
  0x15   :  { %38 = dma.hbm_to_vmem [thread:$0]  %s1447_s3, 7168, %s33_s24, [#allocation5], %s1312_s29, %s1312_s29, %s1313_s30  }
  0x16   :  { %1306 = dma.done.wait [#allocation3], 64  }
  0x17   :  { %1307 = vsyncadd [#allocation3], 4294967232 }
  0x18   :  { %1308 = dma.done.wait [#allocation5], 7168  }
  0x19   :  { %1309 = vsyncadd [#allocation5], 4294960128  ;;  %v1314_v0 = vmov 0.0   ;;  %vm1315_vm0 = vmmov 0   ;;  %v1202_v1 = vld [vmem:[#allocation4 + $0x38] sm:$0xff]   ;;  %v1203_v2 = vld [vmem:[#allocation4 + $0x30] sm:$0xff]   ;;  %v166_v18 = vlaneseq }
  0x1a   :  { %1113 = vmatprep.subr.bf16.mxu0 %v1314_v0  ;;  %1129 = vmatprep.mubr.msk.bf16.mxu0 %vm1315_vm0, %v1314_v0  ;;  %v1204_v3 = vld [vmem:[#allocation4 + $0x28] sm:$0xff]   ;;  %v1211_v4 = vld [vmem:[#allocation4 + $0x78] sm:$0xff]   ;;  %v1205_v5 = vld [vmem:[#allocation4 + $0x20] sm:$0xff]   ;;  %vm369_vm1 = vcmask 130048   ;;  %vm866_vm5 = vcmask 64512   ;;  %vm963_vm6 = vcmask 7168  }
  0x1b   :  { %1133 = vmatprep.subr.bf16.mxu1 %v1314_v0  ;;  %1149 = vmatprep.mubr.msk.bf16.mxu1 %vm1315_vm0, %v1314_v0  ;;  %v1212_v6 = vld [vmem:[#allocation4 + $0x70] sm:$0xff]   ;;  %v1206_v7 = vld [vmem:[#allocation4 + $0x18] sm:$0xff]   ;;  %v1213_v8 = vld [vmem:[#allocation4 + $0x68] sm:$0xff]   ;;  %v1384_v19 = vshrl.u32 %v166_v18, 7 }
  0x1c   :  { %1114 = vmatpush3.bf16.msra.mxu0 %v1202_v1  ;;  %1134 = vmatpush3.bf16.msra.mxu1 %v1211_v4  ;;  %v1207_v9 = vld [vmem:[#allocation4 + $0x10] sm:$0xff]   ;;  %v1214_v10 = vld [vmem:[#allocation4 + $0x60] sm:$0xff]   ;;  %v1208_v11 = vld [vmem:[#allocation4 + $0x8] sm:$0xff]  }
  0x1d   :  { %1115 = vmatprep.subr.bf16.mxu0 %v1314_v0  ;;  %1135 = vmatprep.subr.bf16.mxu1 %v1314_v0  ;;  %v1215_v12 = vld [vmem:[#allocation4 + $0x58] sm:$0xff]   ;;  %v1209_v13 = vld [vmem:[#allocation4] sm:$0xff]   ;;  %v1216_v14 = vld [vmem:[#allocation4 + $0x50] sm:$0xff]   ;;  %v168_v20 = vsub.s32 0, %v1384_v19  ;;  %v270_v30 = vsub.s32 1, %v1384_v19 }
  0x1e   :  { %v1210_v15 = vld [vmem:[%s1444_s0] sm:$0xff]   ;;  %v1217_v16 = vld [vmem:[#allocation4 + $0x48] sm:$0xff]   ;;  %v1222_v44 = vld [vmem:[#allocation4 + $0xf0] sm:$0xff]  }
  0x1f   :  { %v1218_v17 = vld [vmem:[#allocation4 + $0x40] sm:$0xff]   ;;  %v1220_v40 = vld [vmem:[#allocation4 + $0xf8] sm:$0xff]   ;;  %v1223_v45 = vld [vmem:[#allocation4 + $0xb0] sm:$0xff]  }
  0x20   :  { %1116 = vmatpush3.bf16.msra.mxu0 %v1203_v2  ;;  %1136 = vmatpush3.bf16.msra.mxu1 %v1212_v6  ;;  %v1390_v21 = vld [vmem:[%s1448_s4] sm:$0xff]  ;;  %v1224_v46 = vld [vmem:[#allocation4 + $0xe8] sm:$0xff]   ;;  %v1230_v52 = vld [vmem:[#allocation4 + $0xd0] sm:$0xff]   ;;  %v417_v2 = vsub.s32 2, %v1384_v19 }
  0x21   :  { %1117 = vmatprep.subr.bf16.mxu0 %v1314_v0  ;;  %1137 = vmatprep.subr.bf16.mxu1 %v1314_v0  ;;  %v169_v23 = vrot.slane %v1390_v21, %v168_v20  ;;  %v271_v31 = vrot.slane %v1390_v21, %v270_v30  ;;  %v1219_v42 = vld [vmem:[%s1445_s1] sm:$0xff]   ;;  %v1225_v47 = vld [vmem:[#allocation4 + $0xa8] sm:$0xff]   ;;  %v1231_v53 = vld [vmem:[#allocation4 + $0x90] sm:$0xff]  }
  0x22   :  { %v1221_v43 = vld [vmem:[#allocation4 + $0xb8] sm:$0xff]   ;;  %v1226_v48 = vld [vmem:[#allocation4 + $0xe0] sm:$0xff]   ;;  %v1232_v54 = vld [vmem:[#allocation4 + $0xc8] sm:$0xff]   ;;  %v418_v4 = vrot.slane %v1390_v21, %v417_v2 }
  0x23   :  { %v1227_v49 = vld [vmem:[#allocation4 + $0xa0] sm:$0xff]   ;;  %v1228_v50 = vld [vmem:[#allocation4 + $0xd8] sm:$0xff]   ;;  %v1233_v55 = vld [vmem:[#allocation4 + $0x88] sm:$0xff]  }
  0x24   :  { %1118 = vmatpush3.bf16.msra.mxu0 %v1204_v3  ;;  %1138 = vmatpush3.bf16.msra.mxu1 %v1213_v8  ;;  %v1229_v51 = vld [vmem:[#allocation4 + $0x98] sm:$0xff]   ;;  %v1234_v56 = vld [vmem:[#allocation4 + $0xc0] sm:$0xff]   ;;  %v1237_v1 = vld [vmem:[#allocation4 + $0x130] sm:$0xff]  }
  0x25   :  { %1119 = vmatprep.subr.bf16.mxu0 %v1314_v0  ;;  %1139 = vmatprep.subr.bf16.mxu1 %v1314_v0  ;;  %v1235_v57 = vld [vmem:[#allocation4 + $0x80] sm:$0xff]   ;;  %v1236_v63 = vld [vmem:[#allocation4 + $0x138] sm:$0xff]   ;;  %v1241_v20 = vld [vmem:[#allocation4 + $0x110] sm:$0xff]  }
  0x26   :  { %v1240_v18 = vld [vmem:[#allocation4 + $0x118] sm:$0xff]  }
  0x28   :  { %1120 = vmatpush3.bf16.msra.mxu0 %v1205_v5  ;;  %1140 = vmatpush3.bf16.msra.mxu1 %v1214_v10 }
  0x29   :  { %1121 = vmatprep.subr.bf16.mxu0 %v1314_v0  ;;  %1141 = vmatprep.subr.bf16.mxu1 %v1314_v0 }
  0x2c   :  { %1122 = vmatpush3.bf16.msra.mxu0 %v1206_v7  ;;  %1142 = vmatpush3.bf16.msra.mxu1 %v1215_v12 }
  0x2d   :  { %1123 = vmatprep.subr.bf16.mxu0 %v1314_v0  ;;  %1143 = vmatprep.subr.bf16.mxu1 %v1314_v0 }
  0x30   :  { %1124 = vmatpush3.bf16.msra.mxu0 %v1207_v9  ;;  %1144 = vmatpush3.bf16.msra.mxu1 %v1216_v14 }
  0x31   :  { %1125 = vmatprep.subr.bf16.mxu0 %v1314_v0  ;;  %1145 = vmatprep.subr.bf16.mxu1 %v1314_v0 }
  0x34   :  { %1126 = vmatpush3.bf16.msra.mxu0 %v1208_v11  ;;  %1146 = vmatpush3.bf16.msra.mxu1 %v1217_v16  ;;  %v1238_v16 = vld [vmem:[#allocation4 + $0x128] sm:$0xff]  }
  0x35   :  { %1127 = vmatprep.subr.bf16.mxu0 %v1314_v0  ;;  %1147 = vmatprep.subr.bf16.mxu1 %v1314_v0 }
  0x38   :  { %1128 = vmatpush3.bf16.msra.mxu0 %v1209_v13  ;;  %1148 = vmatpush3.bf16.msra.mxu1 %v1218_v17  ;;  %v1239_v17 = vld [vmem:[#allocation4 + $0x120] sm:$0xff]  }
  0x39   :  { %1159 = vmatprep.subr.bf16.mxu0 %v1314_v0  ;;  %1153 = vmatprep.subr.bf16.mxu1 %v1314_v0 }
  0x3b   :  { %1130 = vmatmul.mubr.bf16.vlgmr.msra.gmra.mxu0 %v1210_v15 }
  0x3c   :  { %1175 = vmatprep.mubr.msk.bf16.mxu0 %vm1315_vm0, %v1314_v0  ;;  %1160 = vmatpush3.bf16.msra.mxu0 %v1236_v63 }
  0x3d   :  { %1161 = vmatprep.subr.bf16.mxu0 %v1314_v0 }
  0x40   :  { %1162 = vmatpush3.bf16.msra.mxu0 %v1237_v1 }
  0x41   :  { %1163 = vmatprep.subr.bf16.mxu0 %v1314_v0 }
  0x44   :  { %1164 = vmatpush3.bf16.msra.mxu0 %v1238_v16 }
  0x45   :  { %1165 = vmatprep.subr.bf16.mxu0 %v1314_v0 }
  0x48   :  { %1166 = vmatpush3.bf16.msra.mxu0 %v1239_v17 }
  0x49   :  { %1167 = vmatprep.subr.bf16.mxu0 %v1314_v0 }
  0x4c   :  { %1168 = vmatpush3.bf16.msra.mxu0 %v1240_v18 }
  0x4d   :  { %1169 = vmatprep.subr.bf16.mxu0 %v1314_v0 }
  0x50   :  { %1170 = vmatpush3.bf16.msra.mxu0 %v1241_v20 }
  0x51   :  { %1171 = vmatprep.subr.bf16.mxu0 %v1314_v0 }
  0xfb   :  { %v258_v22 = vpop.f32.mrf.mxu0 }
  0xfc   :  { %v1393_v26 = vadd.f32 %v258_v22, %v169_v23  ;;  %v1242_v22 = vld [vmem:[#allocation4 + $0x108] sm:$0xff]  }
  0xfd   :  { %v1131_v24 = vpop.f32.mrf.mxu0  ;;  %1172 = vmatpush3.bf16.msra.mxu0 %v1242_v22 }
  0xfe   :  { %1173 = vmatprep.subr.bf16.mxu0 %v1314_v0 }
  0xff   :  { %v261_v25 = vpop.f32.mrf.mxu0 }
 0x100   :  { %v262_v27 = vadd.f32 %v261_v25, %v169_v23  ;;  %v1243_v23 = vld [vmem:[#allocation4 + $0x100] sm:$0xff]  }
 0x101   :  { %v1132_v28 = vpop.f32.mrf.mxu0  ;;  %1174 = vmatpush3.bf16.msra.mxu0 %v1243_v23 }
 0x102   :  { %v265_v29 = vpack.c.bf16 %v262_v27, %v1393_v26 }
 0x104   :  { %1150 = vmatmul.mubr.bf16.vlgmr.msra.gmra.mxu1 %v265_v29 }
 0x105   :  { %1155 = vmatprep.mubr.msk.bf16.mxu1 %vm1315_vm0, %v1314_v0 }
 0x1c4   :  { %v354_v32 = vpop.f32.mrf.mxu1 }
 0x1c5   :  { %v355_v34 = vadd.f32 %v354_v32, %v271_v31 }
 0x1c6   :  { %v1151_v33 = vpop.f32.mrf.mxu1 }
 0x1c7   :  { %v361_v38 = vmax.f32 %v355_v34, 0.0  ;;  %v1244_v34 = vld [vmem:[#allocation4 + $0x1b8] sm:$0xff]  }
 0x1c8   :  { %v357_v35 = vpop.f32.mrf.mxu1  ;;  %1087 = vmatprep.subr.bf16.mxu0 %v1244_v34 }
 0x1c9   :  { %v358_v36 = vadd.f32 %v357_v35, %v271_v31  ;;  %v1245_v35 = vld [vmem:[#allocation4 + $0x178] sm:$0xff]  }
 0x1ca   :  { %v1152_v37 = vpop.f32.mrf.mxu1 }
 0x1cb   :  { %v362_v39 = vmax.f32 %v358_v36, 0.0  ;;  %v1246_v36 = vld [vmem:[#allocation4 + $0x1b0] sm:$0xff]  }
 0x1cc   :  { %v1247_v37 = vld [vmem:[#allocation4 + $0x170] sm:$0xff]  }
 0x1cd   :  { %v363_v41 = vpack.c.bf16 %v362_v39, %v361_v38  ;;  %v1248_v38 = vld [vmem:[#allocation4 + $0x1a8] sm:$0xff]  }
 0x1ce   :  { %v1249_v39 = vld [vmem:[#allocation4 + $0x168] sm:$0xff]  }
 0x1cf   :  { %1154 = vmatpush3.bf16.msra.mxu1 %v363_v41  ;;  %v1251_v41 = vld [vmem:[#allocation4 + $0x160] sm:$0xff]  }
 0x1d0   :  { %1054 = vmatprep.subr.bf16.mxu1 %v1220_v40  ;;  %v1250_v40 = vld [vmem:[#allocation4 + $0x1a0] sm:$0xff]  }
 0x1d2   :  { %1156 = vmatmul.mubr.msk.bf16.vlgmr.msra.gmra.mxu1 %vm369_vm1, %v1219_v42  ;;  %v1252_v42 = vld [vmem:[#allocation4 + $0x198] sm:$0xff]  }
 0x1d3   :  { %547 = vmatprep.mubr.bf16.mxu1 %v265_v29  ;;  %1055 = vmatpush3.bf16.msra.mxu1 %v1221_v43  ;;  %v1253_v43 = vld [vmem:[#allocation4 + $0x158] sm:$0xff]  }
 0x1d4   :  { %1056 = vmatprep.subr.bf16.mxu1 %v1222_v44  ;;  %v1254_v44 = vld [vmem:[#allocation4 + $0x190] sm:$0xff]  }
 0x1d7   :  { %1057 = vmatpush3.bf16.msra.mxu1 %v1223_v45  ;;  %v1255_v45 = vld [vmem:[#allocation4 + $0x150] sm:$0xff]  }
 0x1d8   :  { %1058 = vmatprep.subr.bf16.mxu1 %v1224_v46  ;;  %v1256_v46 = vld [vmem:[#allocation4 + $0x188] sm:$0xff]  }
 0x1db   :  { %1059 = vmatpush3.bf16.msra.mxu1 %v1225_v47  ;;  %v1257_v47 = vld [vmem:[#allocation4 + $0x148] sm:$0xff]  }
 0x1dc   :  { %1060 = vmatprep.subr.bf16.mxu1 %v1226_v48  ;;  %v1258_v48 = vld [vmem:[#allocation4 + $0x180] sm:$0xff]  }
 0x1df   :  { %1061 = vmatpush3.bf16.msra.mxu1 %v1227_v49  ;;  %v576_v49 = vsub.s32 3, %v1384_v19 }
 0x1e0   :  { %1062 = vmatprep.subr.bf16.mxu1 %v1228_v50 }
 0x1e1   :  { %v577_v50 = vrot.slane %v1390_v21, %v576_v49 }
 0x1e3   :  { %1063 = vmatpush3.bf16.msra.mxu1 %v1229_v51 }
 0x1e4   :  { %1064 = vmatprep.subr.bf16.mxu1 %v1230_v52 }
 0x1e7   :  { %1065 = vmatpush3.bf16.msra.mxu1 %v1231_v53 }
 0x1e8   :  { %1066 = vmatprep.subr.bf16.mxu1 %v1232_v54 }
 0x1eb   :  { %1067 = vmatpush3.bf16.msra.mxu1 %v1233_v55 }
 0x1ec   :  { %1068 = vmatprep.subr.bf16.mxu1 %v1234_v56 }
 0x1ef   :  { %1069 = vmatpush3.bf16.msra.mxu1 %v1235_v57 }
 0x1f0   :  { %1179 = vmatprep.subr.bf16.mxu1 %v1314_v0 }
 0x292   :  { %v407_v58 = vpop.f32.mrf.mxu1 }
 0x294   :  { %v1157_v59 = vpop.f32.mrf.mxu1 }
 0x296   :  { %v410_v60 = vpop.f32.mrf.mxu1 }
 0x297   :  { %v414_v61 = vpack.c.bf16 %v410_v60, %v407_v58  ;;  %v573_v60 = vld [vmem:[#allocation2] sm:$0xf] }
 0x298   :  { %v1158_v62 = vpop.f32.mrf.mxu1 }
 0x299   :  { %548 = vmatmul.mubr.bf16.vlgmr.msra.gmra.mxu1 %v414_v61  ;;  %v1259_v61 = vld [vmem:[#allocation4 + $0x140] sm:$0xff]  }
 0x29a   :  { %1181 = vmatprep.mubr.msk.bf16.mxu1 %vm1315_vm0, %v1314_v0 }
 0x359   :  { %v1070_v3 = vpop.f32.mrf.mxu1 }
 0x35b   :  { %v1071_v5 = vpop.f32.mrf.mxu1 }
 0x35c   :  { %v1072_v6 = vadd.f32 %v1071_v5, %v1070_v3 }
 0x35d   :  { %v1073_v7 = vpop.f32.mrf.mxu1 }
 0x35e   :  { %v550_v8 = vadd.f32 %v1072_v6, %v418_v4 }
 0x35f   :  { %v1074_v9 = vpop.f32.mrf.mxu1 }
 0x360   :  { %v1075_v10 = vadd.f32 %v1074_v9, %v1073_v7  ;;  %v556_v11 = vmax.f32 %v550_v8, 0.0 }
 0x362   :  { %v553_v12 = vadd.f32 %v1075_v10, %v418_v4  ;;  %v558_v13 = vmul.f32 %v556_v11, %v556_v11  ;;  %v716_v4 = vsub.s32 4, %v1384_v19  ;;  %v863_v19 = vld [vmem:[%s1449_s5] sm:$0xff] }
 0x364   :  { %v557_v14 = vmax.f32 %v553_v12, 0.0  ;;  %560 = vadd.xlane.f32.xlu0 %v558_v13  ;;  %v717_v6 = vrot.slane %v1390_v21, %v716_v4  ;;  %v864_v21 = vld [vmem:[%s1449_s5 + $0x8] sm:$0xff] }
 0x366   :  { %v559_v15 = vmul.f32 %v557_v14, %v557_v14 }
 0x368   :  { %562 = vadd.xlane.f32.xlu0 %v559_v15 }
 0x3ed   :  { %v561_v24 = vpop.xlane.xlu0 %560 }
 0x3ee   :  { %1260 = vrsqrt.f32 %v561_v24  ;;  %vm564_vm2 = vcmp.gt.f32.partialorder %v561_v24, 0.0 }
 0x3f1   :  { %v563_v25 = vpop.xlane.xlu0 %562 }
 0x3f2   :  { %1262 = vrsqrt.f32 %v563_v25  ;;  %vm565_vm3 = vcmp.gt.f32.partialorder %v563_v25, 0.0 }
 0x3fb   :  { %v1261_v27 = vpop.eup %1260 }
 0x3fc   :  { %v568_v28 = vsel %vm564_vm2, %v1261_v27, 1.0 }
 0x3fd   :  { %v570_v31 = vmul.f32 %v568_v28, %v556_v11 }
 0x3ff   :  { %v1263_v29 = vpop.eup %1262 }
 0x400   :  { %v569_v30 = vsel %vm565_vm3, %v1263_v29, 1.0 }
 0x401   :  { %v571_v32 = vmul.f32 %v569_v30, %v557_v14  ;;  %v51_v30 = vld [vmem:[%s1448_s4 + $0x8] sm:$0xff] }
 0x403   :  { %v572_v33 = vpack.c.bf16 %v571_v32, %v570_v31 }
 0x405   :  { %1176 = vmatmul.mubr.bf16.vlgmr.msra.gmra.mxu0 %v572_v33 }
 0x406   :  { %846 = vmatprep.mubr.bf16.mxu0 %v572_v33  ;;  %1088 = vmatpush3.bf16.msra.mxu0 %v1245_v35 }
 0x407   :  { %1089 = vmatprep.subr.bf16.mxu0 %v1246_v36 }
 0x40a   :  { %1090 = vmatpush3.bf16.msra.mxu0 %v1247_v37 }
 0x40b   :  { %1091 = vmatprep.subr.bf16.mxu0 %v1248_v38 }
 0x40e   :  { %1092 = vmatpush3.bf16.msra.mxu0 %v1249_v39 }
 0x40f   :  { %1093 = vmatprep.subr.bf16.mxu0 %v1250_v40 }
 0x412   :  { %1094 = vmatpush3.bf16.msra.mxu0 %v1251_v41 }
 0x413   :  { %1095 = vmatprep.subr.bf16.mxu0 %v1252_v42 }
 0x416   :  { %1096 = vmatpush3.bf16.msra.mxu0 %v1253_v43 }
 0x417   :  { %1097 = vmatprep.subr.bf16.mxu0 %v1254_v44 }
 0x41a   :  { %1098 = vmatpush3.bf16.msra.mxu0 %v1255_v45 }
 0x41b   :  { %1099 = vmatprep.subr.bf16.mxu0 %v1256_v46 }
 0x41e   :  { %1100 = vmatpush3.bf16.msra.mxu0 %v1257_v47 }
 0x41f   :  { %1101 = vmatprep.subr.bf16.mxu0 %v1258_v48 }
 0x422   :  { %1102 = vmatpush3.bf16.msra.mxu0 %v1259_v61 }
 0x4c5   :  { %v660_v51 = vpop.f32.mrf.mxu0 }
 0x4c6   :  { %v661_v53 = vadd.f32 %v660_v51, %v577_v50 }
 0x4c7   :  { %v1177_v52 = vpop.f32.mrf.mxu0 }
 0x4c8   :  { %v667_v57 = vmax.f32 %v661_v53, 0.0 }
 0x4c9   :  { %v663_v54 = vpop.f32.mrf.mxu0 }
 0x4ca   :  { %v664_v55 = vadd.f32 %v663_v54, %v577_v50 }
 0x4cb   :  { %v1178_v56 = vpop.f32.mrf.mxu0 }
 0x4cc   :  { %v668_v58 = vmax.f32 %v664_v55, 0.0 }
 0x4ce   :  { %v669_v59 = vpack.c.bf16 %v668_v58, %v667_v57 }
 0x4d0   :  { %1180 = vmatpush3.bf16.msra.mxu1 %v669_v59 }
 0x4d1   :  { %1185 = vmatprep.subr.mxu1 %v1314_v0 }
 0x4d3   :  { %1182 = vmatmul.mubr.msk.bf16.vlgmr.msra.gmra.mxu1 %vm369_vm1, %v573_v60 }
 0x4d4   :  { %1187 = vmatprep.mubr.msk.f32.mxu1 %vm1315_vm0, %v1314_v0 }
 0x593   :  { %v707_v62 = vpop.f32.mrf.mxu1 }
 0x594   :  { %v713_v63 = vpack.c.bf16 %v707_v62, %v707_v62 }
 0x595   :  { %v1183_v1 = vpop.f32.mrf.mxu1 }
 0x596   :  { %847 = vmatmul.mubr.bf16.vlgmr.msra.gmra.mxu0 %v713_v63 }
 0x597   :  { %v710_v2 = vpop.f32.mrf.mxu1 }
 0x599   :  { %v1184_v3 = vpop.f32.mrf.mxu1 }
 0x656   :  { %v1103_v5 = vpop.f32.mrf.mxu0 }
 0x658   :  { %v1104_v7 = vpop.f32.mrf.mxu0 }
 0x659   :  { %v1105_v8 = vadd.f32 %v1104_v7, %v1103_v5 }
 0x65a   :  { %v1106_v9 = vpop.f32.mrf.mxu0 }
 0x65b   :  { %v849_v10 = vadd.f32 %v1105_v8, %v717_v6 }
 0x65c   :  { %v1107_v11 = vpop.f32.mrf.mxu0 }
 0x65d   :  { %v854_v12 = vmax.f32 %v849_v10, 0.0 }
 0x65f   :  { %v855_v13 = vmul.f32 %v854_v12, %v854_v12 }
 0x661   :  { %856 = vadd.xlane.f32.xlu1 %v855_v13 }
 0x6ea   :  { %v857_v14 = vpop.xlane.xlu1 %856 }
 0x6eb   :  { %1264 = vrsqrt.f32 %v857_v14  ;;  %vm858_vm4 = vcmp.gt.f32.partialorder %v857_v14, 0.0 }
 0x6f8   :  { %v1265_v15 = vpop.eup %1264 }
 0x6f9   :  { %v860_v16 = vsel %vm858_vm4, %v1265_v15, 1.0 }
 0x6fa   :  { %v861_v17 = vmul.f32 %v860_v16, %v854_v12 }
 0x6fc   :  { %v862_v18 = vadd.f32 %v861_v17, %v1393_v26  ;;  %v865_v26 = vld [vmem:[%s1449_s5 + $0x10] sm:$0xff] }
 0x6fe   :  { %1186 = vmatpush3.msra.mxu1 %v862_v18 }
 0x6ff   :  { %1188 = vmatmul.mubr.msk.f32.vlgmr.msra.gmra.mxu1 %vm866_vm5, %v863_v19 }
 0x700   :  { %1190 = vmatprep.mubr.msk.f32.mxu1 %vm1315_vm0, %v1314_v0 }
 0x703   :  { %1191 = vmatmul.mubr.msk.f32.gmra.mxu1 %vm866_vm5, %v864_v21 }
 0x704   :  { %1193 = vmatprep.mubr.msk.f32.mxu1 %vm1315_vm0, %v1314_v0 }
 0x707   :  { %1194 = vmatmul.mubr.msk.f32.gmra.mxu1 %vm866_vm5, %v865_v26 }
 0x7bf   :  { %v942_v20 = vpop.f32.mrf.mxu1 }
 0x7c1   :  { %v1189_v22 = vpop.f32.mrf.mxu1 }
 0x7c3   :  { %v947_v23 = vpop.f32.mrf.mxu1 }
 0x7c5   :  { %v1192_v24 = vpop.f32.mrf.mxu1 }
 0x7c7   :  { %v952_v25 = vpop.f32.mrf.mxu1 }
 0x7c8   :  { %v956_v27 = vsub.f32 %v952_v25, %v947_v23 }
 0x7c9   :  { %v1195_v28 = vpop.f32.mrf.mxu1 }
 0x7ca   :  { %v957_v29 = vmul.f32 %v956_v27, %v942_v20 }
 0x7cc   :  { %958 = vadd.xlane.f32.xlu1 %v957_v29 }
 0x855   :  { %v959_v31 = vpop.xlane.xlu1 %958 }
 0x856   :  { %v960_v0 = vadd.f32 %v959_v31, %v51_v30 }
 0x858   :  { %v961_v32 = vadd.f32 1.0, %v960_v0 }
 0x85a   :  { %v962_v33 = vmax.f32 %v961_v32, 0.0 }
 0x85c   :  { %964 = vst.msk [vmem:[%s1450_s6] sm:$0xff] %vm963_vm6, %v962_v33 }
 0x85d   :  { %969 = vsyncpa [#allocation3], 1 }
 0x85e   :  { %970 = vsyncpa [#allocation5], 1 }

</bundles_post_ra>
